<compile_context>
chip_gen: v5e
topology: v5e:2x2
jax: 0.10.0
libtpu: 0.0.40
codegen_flags: <defaults>
</compile_context>

<pallas_src>
import math

import jax
import jax.numpy as jnp
from jax.experimental import pallas as pl
from jax.experimental.pallas import tpu as pltpu


def _attention_classifier_kernel(hidden_ref, mask_ref, type_embed_ref,
                                 attn_fc_ref, w_ref, b_ref, out_ref,
                                 m_sc, l_sc, acc_sc):
    # hidden_ref     : (Bt, St, H)  native dtype (f32 or bf16) -- never up-cast
    # mask_ref       : (Bt, St)     0/1
    # type_embed_ref : (Bt, H)
    # attn_fc_ref    : (1, H)       self.attn.fc transposed
    # w_ref          : (H, Cp)      linear weight, transposed + lane-padded
    # b_ref          : (1, Cp)      linear bias, lane-padded, f32
    # out_ref        : (Bt, Cp)     f32 (written on the last sequence tile)
    # m_sc, l_sc     : (Bt, 1)      f32 running max / running sum
    # acc_sc         : (Bt, H)      f32 running weighted sum of hidden
    j = pl.program_id(1)

    @pl.when(j == 0)
    def _init():
        m_sc[...] = jnp.full(m_sc.shape, -jnp.inf, dtype=m_sc.dtype)
        l_sc[...] = jnp.zeros(l_sc.shape, dtype=l_sc.dtype)
        acc_sc[...] = jnp.zeros(acc_sc.shape, dtype=acc_sc.dtype)

    hidden = hidden_ref[...]                                   # (Bt, St, H)
    mask = mask_ref[...]                                       # (Bt, St)

    # fc = self.fc + type_embed  -> per-example query (tiny; f32 add, then
    # cast down to the MXU input dtype).
    fc_q = (attn_fc_ref[...].astype(jnp.float32)
            + type_embed_ref[...].astype(jnp.float32))         # (Bt, H)
    fc_q3 = fc_q.astype(hidden.dtype)[:, None, :]              # (Bt, 1, H)

    # q = (hidden_state @ fc).squeeze(-1): MXU batched contraction in the
    # native dtype with f32 accumulation; squeeze to a lane-dense (Bt, St).
    s = jnp.einsum('bqh,bsh->bqs', fc_q3, hidden,
                   preferred_element_type=jnp.float32)[:, 0, :]  # (Bt, St)

    # q.masked_fill((1 - mask).bool(), -10000.0): exactly mask == 0.
    s = jnp.where(mask == 0, jnp.float32(-10000.0), s)

    # Online (flash-style) softmax accumulation over sequence tiles.
    m_prev = m_sc[...]                                         # (Bt, 1)
    m_new = jnp.maximum(m_prev, jnp.max(s, axis=-1, keepdims=True))
    alpha = jnp.exp(m_prev - m_new)                            # (Bt, 1)
    p = jnp.exp(s - m_new)                                     # (Bt, St) f32
    l_sc[...] = alpha * l_sc[...] + jnp.sum(p, axis=-1, keepdims=True)

    # h += p @ hidden_state : MXU batched matmul, native-dtype operands.
    pooled = jnp.einsum('bqs,bsh->bqh',
                        p.astype(hidden.dtype)[:, None, :], hidden,
                        preferred_element_type=jnp.float32)[:, 0, :]  # (Bt, H)
    acc_sc[...] = alpha * acc_sc[...] + pooled
    m_sc[...] = m_new

    @pl.when(j == pl.num_programs(1) - 1)
    def _finish():
        # Exact divide for the softmax normalization (tiny tensor).
        h = acc_sc[...] / l_sc[...]                            # (Bt, H) f32
        w = w_ref[...]                                         # (H, Cp)
        out = jnp.dot(h.astype(w.dtype), w,
                      preferred_element_type=jnp.float32) + b_ref[...]
        out_ref[...] = out.astype(out_ref.dtype)               # (Bt, Cp)


def _vmem_capacity_bytes():
    """Physical VMEM per core (128 MiB on v5e/v6e, 64 MiB on v7x)."""
    try:
        return int(pltpu.get_tpu_info().vmem_capacity_bytes)
    except Exception:
        return 64 << 20   # conservative fallback (v7x per-TC)


def _footprint_bytes(bt, st, H, Cp, hid_isz, mask_isz, te_isz, w_isz):
    """True VMEM working set for one grid step (double-buffered tiles +
    resident params + scratch + f32 intermediates)."""
    per_step = 2 * (bt * st * H * hid_isz      # hidden tile (double-buffered)
                    + bt * st * mask_isz       # mask tile
                    + bt * H * te_isz          # type_embed tile
                    + bt * Cp * 4)             # f32 output tile
    resident = 2 * (H * Cp * w_isz + Cp * 4 + H * 4)   # head W/b + attn fc
    scratch = bt * (H + 2) * 4                 # online-softmax accumulators
    interm = 3 * bt * st * 4 + 2 * bt * H * 4  # scores / probs / pooled
    return per_step + resident + scratch + interm


def _select_tiles(B, S, H, Cp, hid_isz, mask_isz, te_isz, w_isz, budget_bytes):
    """Pick (Bt, St) keeping all blocks (8,128)-legal:
    Bt is B itself or a multiple of 8 dividing B; St is S itself or a multiple
    of 128 dividing S (mask is a 2-D (B,S) array, so its last block dim must
    be 128-aligned unless it spans the full sequence)."""
    bts = [B]
    if B % 8 == 0:
        bts += [bt for bt in range(B - 8, 0, -8) if B % bt == 0]
    sts = [S]
    if S % 128 == 0:
        sts += [st for st in range(S - 128, 0, -128) if S % st == 0]
    # TODO(synk): when S is very long but not a multiple of 128, reshape the
    # mask to (B, S, 1) in the wrapper to relax the seq-tiling constraint.

    chosen = None
    for st in sts:                 # prefer the full sequence per tile ...
        for bt in bts:             # ... with the largest batch tile that fits
            if _footprint_bytes(bt, st, H, Cp, hid_isz, mask_isz, te_isz,
                                w_isz) <= budget_bytes:
                chosen = (bt, st)
                break
        if chosen is not None:
            break
    if chosen is None:
        chosen = (bts[-1], sts[-1])   # smallest legal tiles
    bt, st = chosen

    # Megacore (v7x): make sure the "parallel" batch axis has >= 2 tiles so
    # both TensorCores get work; harmless on single-TC chips.
    if B // bt == 1:
        smaller = [b2 for b2 in bts if b2 <= B // 2]
        if smaller:
            bt = smaller[0]
    return bt, st


def attention_classifier(hidden_states, mask, type_embed, attn_fc, lin_w, lin_b,
                         *, batch_tile=None, seq_tile=None):
    """hidden_states (B,S,H), mask (B,S), type_embed (B,H,1),
    attn_fc (H,1), lin_w (C,H), lin_b (C,) -> (B,C) float32."""
    B, S, H = hidden_states.shape
    C = lin_w.shape[0]
    Cp = ((C + 127) // 128) * 128             # lane-dense output width

    # Resident head weight stays in the MXU-native input dtype (bf16 in / f32
    # accumulate); bias is tiny, keep f32.
    param_dtype = hidden_states.dtype
    te_2d = type_embed.reshape(B, H)
    fc_2d = attn_fc.reshape(1, H)
    w_2d = jnp.zeros((H, Cp), param_dtype).at[:, :C].set(
        lin_w.T.astype(param_dtype))
    b_2d = jnp.zeros((1, Cp), jnp.float32).at[:, :C].set(
        lin_b.astype(jnp.float32))

    hid_isz = jnp.dtype(hidden_states.dtype).itemsize
    mask_isz = jnp.dtype(mask.dtype).itemsize
    te_isz = jnp.dtype(type_embed.dtype).itemsize
    w_isz = jnp.dtype(param_dtype).itemsize

    cap = _vmem_capacity_bytes()
    budget = (cap * 65) // 100                 # ~65% of physical VMEM

    Bt, St = _select_tiles(B, S, H, Cp, hid_isz, mask_isz, te_isz, w_isz,
                           budget)
    if batch_tile is not None:
        Bt = batch_tile
    if seq_tile is not None:
        St = seq_tile
    assert B % Bt == 0 and S % St == 0, (B, Bt, S, St)

    est = _footprint_bytes(Bt, St, H, Cp, hid_isz, mask_isz, te_isz, w_isz)
    vmem_limit = max((est * 5) // 4, 32 << 20)        # headroom over true use
    vmem_limit = int(min(vmem_limit, (cap * 9) // 10))  # stay under physical

    grid = (B // Bt, S // St)

    grid_spec = pltpu.PrefetchScalarGridSpec(
        num_scalar_prefetch=0,
        grid=grid,
        in_specs=[
            pl.BlockSpec((Bt, St, H), lambda i, j: (i, j, 0)),   # hidden tile
            pl.BlockSpec((Bt, St), lambda i, j: (i, j)),         # mask tile
            pl.BlockSpec((Bt, H), lambda i, j: (i, 0)),          # type_embed
            pl.BlockSpec((1, H), lambda i, j: (0, 0)),           # attn fc
            pl.BlockSpec((H, Cp), lambda i, j: (0, 0)),          # head weight
            pl.BlockSpec((1, Cp), lambda i, j: (0, 0)),          # head bias
        ],
        out_specs=pl.BlockSpec((Bt, Cp), lambda i, j: (i, 0)),
        scratch_shapes=[
            pltpu.VMEM((Bt, 1), jnp.float32),   # running max
            pltpu.VMEM((Bt, 1), jnp.float32),   # running sum
            pltpu.VMEM((Bt, H), jnp.float32),   # running weighted sum
        ],
    )

    out_padded = pl.pallas_call(
        _attention_classifier_kernel,
        out_shape=jax.ShapeDtypeStruct((B, Cp), jnp.float32),
        grid_spec=grid_spec,
        compiler_params=pltpu.CompilerParams(
            dimension_semantics=("parallel", "arbitrary"),
            vmem_limit_bytes=vmem_limit),
    )(hidden_states, mask, te_2d, fc_2d, w_2d, b_2d)

    return out_padded[:, :C]


def _reference(hidden_states, mask, type_embed, attn_fc, lin_w, lin_b):
    """Pure-JAX reference mirroring the PyTorch forward exactly."""
    hs = hidden_states.astype(jnp.float32)
    fc = attn_fc + type_embed                                # (B, H, 1)
    q = jnp.squeeze(hs @ fc, axis=-1)                        # (B, S)
    q = jnp.where(mask == 0, jnp.float32(-10000.0), q)
    w = jax.nn.softmax(q, axis=-1)[:, None, :]               # (B, 1, S)
    h = jnp.squeeze(w @ hs, axis=1)                          # (B, H)
    return h @ lin_w.T + lin_b


if __name__ == "__main__":
    B, S, H, C = 2, 8, 32, 4
    key = jax.random.PRNGKey(0)
    k1, k2, k3, k4, k5 = jax.random.split(key, 5)

    hidden_states = jax.random.normal(k1, (B, S, H), dtype=jnp.float32)
    # mask: first few positions valid per example (0/1)
    mask = (jnp.arange(S)[None, :] < jnp.array([[5], [8]])).astype(jnp.float32)
    type_embed = 0.1 * jax.random.normal(k2, (B, H, 1), dtype=jnp.float32)

    # Deterministic parameter init (shapes from the module's __init__).
    # attn.fc: (H, 1), kaiming_uniform(a=sqrt(5)) -> bound = 1/sqrt(fan_in)=1
    attn_fc = jax.random.uniform(k3, (H, 1), minval=-1.0, maxval=1.0,
                                 dtype=jnp.float32)
    # nn.Linear(H, C): weight (C, H), bias (C,), uniform(-1/sqrt(H), 1/sqrt(H))
    bound = 1.0 / math.sqrt(H)
    lin_w = jax.random.uniform(k4, (C, H), minval=-bound, maxval=bound,
                               dtype=jnp.float32)
    lin_b = jax.random.uniform(k5, (C,), minval=-bound, maxval=bound,
                               dtype=jnp.float32)

    out = attention_classifier(hidden_states, mask, type_embed,
                               attn_fc, lin_w, lin_b)
    out = jax.block_until_ready(out)

    ref = _reference(hidden_states, mask, type_embed, attn_fc, lin_w, lin_b)
    assert out.shape == (B, C), out.shape
    # Exact divide in the softmax normalization -> tolerance tightened vs the
    # previous approx-reciprocal version (residual error is MXU f32 matmul +
    # online-softmax reassociation only).
    assert jnp.allclose(out, ref, atol=5e-4, rtol=5e-4), (out, ref)

    print("KERNEL_OK")
</pallas_src>

<mosaic_0001>
module attributes {stable_mosaic.version = 11 : i64} {
  func.func @_attention_classifier_kernel(%arg0: i32, %arg1: i32, %arg2: memref<2x8x32xf32, #tpu.memory_space<vmem>>, %arg3: memref<2x8xf32, #tpu.memory_space<vmem>>, %arg4: memref<2x32xf32, #tpu.memory_space<vmem>>, %arg5: memref<1x32xf32, #tpu.memory_space<vmem>>, %arg6: memref<32x128xf32, #tpu.memory_space<vmem>>, %arg7: memref<1x128xf32, #tpu.memory_space<vmem>>, %arg8: memref<2x128xf32, #tpu.memory_space<vmem>>, %arg9: memref<2x1xf32, #tpu.memory_space<vmem>>, %arg10: memref<2x1xf32, #tpu.memory_space<vmem>>, %arg11: memref<2x32xf32, #tpu.memory_space<vmem>>) attributes {dimension_semantics = [#tpu.dimension_semantics<parallel>, #tpu.dimension_semantics<arbitrary>], iteration_bounds = array<i64: 1, 1>, scalar_prefetch = 0 : i64, scratch_operands = 3 : i64, tpu.core_type = #tpu.core_type<tc>, window_params = [{transform_indices = @transform_0, window_bounds = array<i64: 2, 8, 32>}, {transform_indices = @transform_1, window_bounds = array<i64: 2, 8>}, {transform_indices = @transform_2, window_bounds = array<i64: 2, 32>}, {pipeline_mode = #tpu.pipeline_mode<synchronous>, transform_indices = @transform_3, window_bounds = array<i64: 1, 32>}, {pipeline_mode = #tpu.pipeline_mode<synchronous>, transform_indices = @transform_4, window_bounds = array<i64: 32, 128>}, {pipeline_mode = #tpu.pipeline_mode<synchronous>, transform_indices = @transform_5, window_bounds = array<i64: 1, 128>}, {transform_indices = @transform_6, window_bounds = array<i64: 2, 128>}]} {
    %c0_i32 = arith.constant 0 : i32
    %0 = arith.cmpi eq, %arg1, %c0_i32 : i32
    %1 = arith.extui %0 : i1 to i32
    %c0_i32_0 = arith.constant 0 : i32
    %2 = arith.cmpi ne, %1, %c0_i32_0 : i32
    scf.if %2 {
      %cst_28 = arith.constant 0xFF800000 : f32
      %43 = vector.broadcast %cst_28 : f32 to vector<2x1xf32>
      %c0_29 = arith.constant 0 : index
      %c0_30 = arith.constant 0 : index
      %44 = vector.load %arg9[%c0_29, %c0_30] : memref<2x1xf32, #tpu.memory_space<vmem>>, vector<2x1xf32>
      tpu.vector_store %arg9[%c0_29, %c0_30], %43 {strides = array<i32>} : memref<2x1xf32, #tpu.memory_space<vmem>>, vector<2x1xf32>,
      %cst_31 = arith.constant 0.000000e+00 : f32
      %45 = vector.broadcast %cst_31 : f32 to vector<2x1xf32>
      %c0_32 = arith.constant 0 : index
      %c0_33 = arith.constant 0 : index
      %46 = vector.load %arg10[%c0_32, %c0_33] : memref<2x1xf32, #tpu.memory_space<vmem>>, vector<2x1xf32>
      tpu.vector_store %arg10[%c0_32, %c0_33], %45 {strides = array<i32>} : memref<2x1xf32, #tpu.memory_space<vmem>>, vector<2x1xf32>,
      %cst_34 = arith.constant 0.000000e+00 : f32
      %47 = vector.broadcast %cst_34 : f32 to vector<2x32xf32>
      %c0_35 = arith.constant 0 : index
      %c0_36 = arith.constant 0 : index
      %48 = vector.load %arg11[%c0_35, %c0_36] : memref<2x32xf32, #tpu.memory_space<vmem>>, vector<2x32xf32>
      tpu.vector_store %arg11[%c0_35, %c0_36], %47 {strides = array<i32>} : memref<2x32xf32, #tpu.memory_space<vmem>>, vector<2x32xf32>,
    } else {
    }
    %c0 = arith.constant 0 : index
    %c0_1 = arith.constant 0 : index
    %c0_2 = arith.constant 0 : index
    %3 = vector.load %arg2[%c0, %c0_1, %c0_2] : memref<2x8x32xf32, #tpu.memory_space<vmem>>, vector<2x8x32xf32>
    %c0_3 = arith.constant 0 : index
    %c0_4 = arith.constant 0 : index
    %4 = vector.load %arg3[%c0_3, %c0_4] : memref<2x8xf32, #tpu.memory_space<vmem>>, vector<2x8xf32>
    %c0_5 = arith.constant 0 : index
    %c0_6 = arith.constant 0 : index
    %5 = vector.load %arg5[%c0_5, %c0_6] : memref<1x32xf32, #tpu.memory_space<vmem>>, vector<1x32xf32>
    %c0_7 = arith.constant 0 : index
    %c0_8 = arith.constant 0 : index
    %6 = vector.load %arg4[%c0_7, %c0_8] : memref<2x32xf32, #tpu.memory_space<vmem>>, vector<2x32xf32>
    %7 = vector.broadcast %5 : vector<1x32xf32> to vector<2x32xf32>
    %8 = arith.addf %7, %6 : vector<2x32xf32>
    %9 = vector.shape_cast %8 : vector<2x32xf32> to vector<2x1x32xf32>
    "tpu.trace_start"() <{level = 10 : i32, message = "bqh,bsh->bqs"}> : () -> ()
    %cst = arith.constant dense<0.000000e+00> : vector<2x1x8xf32>
    %10 = tpu.matmul %9, %3, %cst {dimension_numbers = #tpu.dot_dimension_numbers<[2], [2], [1], [1], [0, 0, 0, 1, 1, 1], [0], [0]>} : vector<2x1x32xf32>, vector<2x8x32xf32>, vector<2x1x8xf32> -> vector<2x1x8xf32>
    "tpu.trace_stop"() : () -> ()
    %11 = vector.shape_cast %10 : vector<2x1x8xf32> to vector<2x8xf32>
    %cst_9 = arith.constant 0.000000e+00 : f32
    %12 = vector.broadcast %cst_9 : f32 to vector<2x8xf32>
    %13 = arith.cmpf oeq, %4, %12 : vector<2x8xf32>
    %cst_10 = arith.constant -1.000000e+04 : f32
    %14 = vector.broadcast %cst_10 : f32 to vector<2x8xf32>
    %15 = arith.select %13, %14, %11 : vector<2x8xi1>, vector<2x8xf32>
    %c0_11 = arith.constant 0 : index
    %c0_12 = arith.constant 0 : index
    %16 = vector.load %arg9[%c0_11, %c0_12] : memref<2x1xf32, #tpu.memory_space<vmem>>, vector<2x1xf32>
    %cst_13 = arith.constant dense<0xFF800000> : vector<2xf32>
    %17 = vector.multi_reduction <maximumf>, %15, %cst_13 [1] : vector<2x8xf32> to vector<2xf32>
    %18 = vector.shape_cast %17 : vector<2xf32> to vector<2x1xf32>
    %19 = arith.maximumf %16, %18 : vector<2x1xf32>
    %20 = arith.subf %16, %19 : vector<2x1xf32>
    %21 = math.exp %20 : vector<2x1xf32>
    %22 = vector.broadcast %19 : vector<2x1xf32> to vector<2x8xf32>
    %23 = arith.subf %15, %22 : vector<2x8xf32>
    %24 = math.exp %23 : vector<2x8xf32>
    %c0_14 = arith.constant 0 : index
    %c0_15 = arith.constant 0 : index
    %25 = vector.load %arg10[%c0_14, %c0_15] : memref<2x1xf32, #tpu.memory_space<vmem>>, vector<2x1xf32>
    %26 = arith.mulf %21, %25 : vector<2x1xf32>
    %cst_16 = arith.constant dense<0.000000e+00> : vector<2xf32>
    %27 = vector.multi_reduction <add>, %24, %cst_16 [1] : vector<2x8xf32> to vector<2xf32>
    %28 = vector.shape_cast %27 : vector<2xf32> to vector<2x1xf32>
    %29 = arith.addf %26, %28 : vector<2x1xf32>
    %c0_17 = arith.constant 0 : index
    %c0_18 = arith.constant 0 : index
    %30 = vector.load %arg10[%c0_17, %c0_18] : memref<2x1xf32, #tpu.memory_space<vmem>>, vector<2x1xf32>
    tpu.vector_store %arg10[%c0_17, %c0_18], %29 {strides = array<i32>} : memref<2x1xf32, #tpu.memory_space<vmem>>, vector<2x1xf32>,
    %31 = vector.shape_cast %24 : vector<2x8xf32> to vector<2x1x8xf32>
    "tpu.trace_start"() <{level = 10 : i32, message = "bqs,bsh->bqh"}> : () -> ()
    %cst_19 = arith.constant dense<0.000000e+00> : vector<2x1x32xf32>
    %32 = tpu.matmul %31, %3, %cst_19 {dimension_numbers = #tpu.dot_dimension_numbers<[2], [1], [1], [2], [0, 0, 0, 1, 1, 2], [0], [0]>} : vector<2x1x8xf32>, vector<2x8x32xf32>, vector<2x1x32xf32> -> vector<2x1x32xf32>
    "tpu.trace_stop"() : () -> ()
    %33 = vector.shape_cast %32 : vector<2x1x32xf32> to vector<2x32xf32>
    %c0_20 = arith.constant 0 : index
    %c0_21 = arith.constant 0 : index
    %34 = vector.load %arg11[%c0_20, %c0_21] : memref<2x32xf32, #tpu.memory_space<vmem>>, vector<2x32xf32>
    %35 = vector.broadcast %21 : vector<2x1xf32> to vector<2x32xf32>
    %36 = arith.mulf %35, %34 : vector<2x32xf32>
    %37 = arith.addf %36, %33 : vector<2x32xf32>
    %c0_22 = arith.constant 0 : index
    %c0_23 = arith.constant 0 : index
    %38 = vector.load %arg11[%c0_22, %c0_23] : memref<2x32xf32, #tpu.memory_space<vmem>>, vector<2x32xf32>
    tpu.vector_store %arg11[%c0_22, %c0_23], %37 {strides = array<i32>} : memref<2x32xf32, #tpu.memory_space<vmem>>, vector<2x32xf32>,
    %c0_24 = arith.constant 0 : index
    %c0_25 = arith.constant 0 : index
    %39 = vector.load %arg9[%c0_24, %c0_25] : memref<2x1xf32, #tpu.memory_space<vmem>>, vector<2x1xf32>
    tpu.vector_store %arg9[%c0_24, %c0_25], %19 {strides = array<i32>} : memref<2x1xf32, #tpu.memory_space<vmem>>, vector<2x1xf32>,
    %c0_i32_26 = arith.constant 0 : i32
    %40 = arith.cmpi eq, %arg1, %c0_i32_26 : i32
    %41 = arith.extui %40 : i1 to i32
    %c0_i32_27 = arith.constant 0 : i32
    %42 = arith.cmpi ne, %41, %c0_i32_27 : i32
    scf.if %42 {
      %c0_28 = arith.constant 0 : index
      %c0_29 = arith.constant 0 : index
      %43 = vector.load %arg11[%c0_28, %c0_29] : memref<2x32xf32, #tpu.memory_space<vmem>>, vector<2x32xf32>
      %c0_30 = arith.constant 0 : index
      %c0_31 = arith.constant 0 : index
      %44 = vector.load %arg10[%c0_30, %c0_31] : memref<2x1xf32, #tpu.memory_space<vmem>>, vector<2x1xf32>
      %45 = vector.broadcast %44 : vector<2x1xf32> to vector<2x32xf32>
      %46 = arith.divf %43, %45 : vector<2x32xf32>
      %c0_32 = arith.constant 0 : index
      %c0_33 = arith.constant 0 : index
      %47 = vector.load %arg6[%c0_32, %c0_33] : memref<32x128xf32, #tpu.memory_space<vmem>>, vector<32x128xf32>
      %cst_34 = arith.constant dense<0.000000e+00> : vector<2x128xf32>
      %48 = tpu.matmul %46, %47, %cst_34 {dimension_numbers = #tpu.dot_dimension_numbers<[1], [0], [0], [1], [0, 0, 1, 1], [], []>} : vector<2x32xf32>, vector<32x128xf32>, vector<2x128xf32> -> vector<2x128xf32>
      %c0_35 = arith.constant 0 : index
      %c0_36 = arith.constant 0 : index
      %49 = vector.load %arg7[%c0_35, %c0_36] : memref<1x128xf32, #tpu.memory_space<vmem>>, vector<1x128xf32>
      %50 = vector.broadcast %49 : vector<1x128xf32> to vector<2x128xf32>
      %51 = arith.addf %48, %50 : vector<2x128xf32>
      %c0_37 = arith.constant 0 : index
      %c0_38 = arith.constant 0 : index
      %52 = vector.load %arg8[%c0_37, %c0_38] : memref<2x128xf32, #tpu.memory_space<vmem>>, vector<2x128xf32>
      tpu.vector_store %arg8[%c0_37, %c0_38], %51 {strides = array<i32>} : memref<2x128xf32, #tpu.memory_space<vmem>>, vector<2x128xf32>,
    } else {
    }
    return
  }
  func.func @transform_0(%arg0: i32, %arg1: i32) -> (i32, i32, i32) {
    %c0_i32 = arith.constant 0 : i32
    %c0_i32_0 = arith.constant 0 : i32
    return %arg0, %arg1, %c0_i32 : i32, i32, i32
  }
  func.func @transform_1(%arg0: i32, %arg1: i32) -> (i32, i32) {
    %c0_i32 = arith.constant 0 : i32
    return %arg0, %arg1 : i32, i32
  }
  func.func @transform_2(%arg0: i32, %arg1: i32) -> (i32, i32) {
    %c0_i32 = arith.constant 0 : i32
    %c0_i32_0 = arith.constant 0 : i32
    return %arg0, %c0_i32 : i32, i32
  }
  func.func @transform_3(%arg0: i32, %arg1: i32) -> (i32, i32) {
    %c0_i32 = arith.constant 0 : i32
    %c0_i32_0 = arith.constant 0 : i32
    %c0_i32_1 = arith.constant 0 : i32
    return %c0_i32, %c0_i32_0 : i32, i32
  }
  func.func @transform_4(%arg0: i32, %arg1: i32) -> (i32, i32) {
    %c0_i32 = arith.constant 0 : i32
    %c0_i32_0 = arith.constant 0 : i32
    %c0_i32_1 = arith.constant 0 : i32
    return %c0_i32, %c0_i32_0 : i32, i32
  }
  func.func @transform_5(%arg0: i32, %arg1: i32) -> (i32, i32) {
    %c0_i32 = arith.constant 0 : i32
    %c0_i32_0 = arith.constant 0 : i32
    %c0_i32_1 = arith.constant 0 : i32
    return %c0_i32, %c0_i32_0 : i32, i32
  }
  func.func @transform_6(%arg0: i32, %arg1: i32) -> (i32, i32) {
    %c0_i32 = arith.constant 0 : i32
    %c0_i32_0 = arith.constant 0 : i32
    return %arg0, %c0_i32 : i32, i32
  }
}

</mosaic_0001>

<bundles_post_ra>
// kernel: tpu_custom_call.1
= control target key start
LH: loop header
LB: loop body
LE: loop exit
PB: predicated region body
PF: predicated region fallthrough
CT: control target
= control target key end

     0   :  { %11 = vsyncpa [#allocation6], 0  ;;  %s563_s0 = inlined_call_operand.hbm [shape: f32[2,8,32], index: 0, kind: input, shape index: {}]   ;;  %s564_s1 = inlined_call_operand.hbm [shape: f32[2,8], index: 1, kind: input, shape index: {}]   ;;  %s565_s2 = inlined_call_operand.hbm [shape: f32[2,32], index: 2, kind: input, shape index: {}]   ;;  %s566_s3 = inlined_call_operand.vmem [shape: f32[1,32], index: 3, kind: input, shape index: {}]   ;;  %s567_s4 = inlined_call_operand.hbm [shape: f32[32,128], index: 4, kind: input, shape index: {}]   ;;  %s568_s5 = inlined_call_operand.vmem [shape: f32[1,128], index: 5, kind: input, shape index: {}]   ;;  %s569_s6 = inlined_call_operand.hbm [shape: f32[2,128], index: 6, kind: output, shape index: {}]  }
   0x1   :  { %12 = vsyncpa [#allocation9], 0 }
   0x2   :  { %13 = vsyncpa [#allocation12], 0  ;;  %s33_s23 = sshll.u32 %s564_s1, 4  ;;  %s34_s23 = int_to_ptr.hbm [resolvable:$true] %s33_s23 }
   0x3   :  { %14 = vsyncpa [#allocation7], 0  ;;  %s482_s24 = smov [#allocation8]   ;;  %s19_s28 = sshll.u32 %s563_s0, 4  ;;  %s20_s28 = int_to_ptr.hbm [resolvable:$true] %s19_s28 }
   0x4   :  { %s35_s25 = sshll.u32 %s482_s24, 4  ;;  %s483_s29 = smov [#allocation5]   ;;  %s36_s25 = int_to_ptr.vmem [resolvable:$true] %s35_s25 }
   0x5   :  { %38 = dma.hbm_to_vmem [thread:$0]  %s34_s23, 32, %s36_s25, [#allocation9]  }
   0x6   :  { %s21_s30 = sshll.u32 %s483_s29, 4  ;;  %s484_s7 = smov 128   ;;  %s22_s30 = int_to_ptr.vmem [resolvable:$true] %s21_s30 }
   0x7   :  { %s485_s8 = smov 8   ;;  %s44_s1 = sshll.u32 %s565_s2, 4  ;;  %s45_s1 = int_to_ptr.hbm [resolvable:$true] %s44_s1 }
   0x8   :  { %27 = dma.hbm_to_vmem [thread:$0]  %s20_s28, 256, %s22_s30, [#allocation6], %s484_s7, %s484_s7, %s485_s8  }
   0x9   :  { %s486_s11 = smov [#allocation10]   ;;  %s56_s0 = sshll.u32 %s567_s4, 4  ;;  %s57_s0 = int_to_ptr.hbm [resolvable:$true] %s56_s0 }
   0xa   :  { %s46_s12 = sshll.u32 %s486_s11, 4  ;;  %s487_s15 = smov [#allocation11]   ;;  %s47_s12 = int_to_ptr.vmem [resolvable:$true] %s46_s12 }
   0xb   :  { %49 = dma.hbm_to_vmem [thread:$0]  %s45_s1, 32, %s47_s12, [#allocation9]  }
   0xc   :  { %s58_s16 = sshll.u32 %s487_s15, 4  ;;  %s59_s16 = int_to_ptr.vmem [resolvable:$true] %s58_s16 }
   0xd   :  { %64 = dma.hbm_to_vmem [thread:$0]  %s57_s0, 512, %s59_s16, [#allocation12], %s484_s7, %s484_s7, %s485_s8  }
   0xe   :  { %474 = dma.done.wait [#allocation6], 256  }
   0xf   :  { %475 = vsyncadd [#allocation6], 4294967040 }
  0x10   :  { %476 = dma.done.wait [#allocation9], 64  }
  0x11   :  { %477 = vsyncadd [#allocation9], 4294967232 }
  0x12   :  { %478 = dma.done.wait [#allocation12], 512  }
  0x13   :  { %479 = vsyncadd [#allocation12], 4294966784  ;;  %vm103_vm0 = vcmask 261120   ;;  %v93_v0 = vld [vmem:[#allocation5 + $0x8] sm:$0xff]  ;;  %v92_v1 = vld [vmem:[#allocation5] sm:$0xff]  ;;  %vm87_vm1 = vcmask 1024  }
  0x14   :  { %328 = vmatpush.xpose.msk.msra.mxu1 %vm103_vm0, %v93_v0  ;;  %326 = vmatpush.xpose.msk.msra.mxu0 %vm103_vm0, %v92_v1  ;;  %v96_v2 = vld [vmem:[#allocation10] sm:$0x3]  ;;  %v346_v3 = vld [vmem:[%s566_s3] ss:$0 sm:$0xff]  ;;  %v488_v6 = vmov -inf   ;;  %vm158_vm2 = vcmask 1041409  }
  0x15   :  { %207 = vmatpush.msra.mxu2 %v92_v1  ;;  %229 = vmatpush.msra.mxu3 %v93_v0  ;;  %v100_v4 = vadd.f32 %v346_v3, %v96_v2  ;;  %88 = vst.msk [vmem:[#allocation2] sm:$0x3] %vm87_vm1, %v488_v6  ;;  %v94_v7 = vld [vmem:[#allocation8] sm:$0x3]  ;;  %vm163_vm4 = vcmask 58368   ;;  %v489_v14 = vmov 0  }
  0x16   :  { %vm154_vm3 = vcmp.eq.f32.partialorder %v94_v7, 0.0  ;;  %343 = vset.pattern.permute.xlu0 %v489_v14  ;;  %345 = vset.pattern.permute.xlu2 %v489_v14  ;;  %v490_v15 = vmov 0.0   ;;  %vm90_vm5 = vcmask 254976   ;;  %vm189_vm6 = vcmask 64512   ;;  %v278_v41 = vld [vmem:[#allocation11 + $0x18] sm:$0xff]  ;;  %v277_v42 = vld [vmem:[#allocation11 + $0x10] sm:$0xff] }
  0x17   :  { %v102_v5 = vrot.slane %v100_v4, 1  ;;  %327 = vmatmul.msk.f32.vlgmr.msra.gmra.mxu0 %vm103_vm0, %v100_v4  ;;  %344 = vset.pattern.permute.xlu1 %v489_v14  ;;  %89 = vst.msk [vmem:[#allocation3] sm:$0x3] %vm87_vm1, %v490_v15  ;;  %v276_v43 = vld [vmem:[#allocation11 + $0x8] sm:$0xff]  ;;  %v275_v44 = vld [vmem:[#allocation11] sm:$0xff]  ;;  %s491_s18 = smov [#allocation13]  }
  0x18   :  { %91 = vst.msk [vmem:[#allocation4] sm:$0x3] %vm90_vm5, %v490_v15  ;;  %298 = vmatpush.msrb.mxu2 %v278_v41  ;;  %v347_v58 = vld [vmem:[%s568_s5] ss:$0 sm:$0xff]  ;;  %s312_s19 = sshll.u32 %s491_s18, 4  ;;  %s314_s22 = sshll.u32 %s569_s6, 4  ;;  %s313_s19 = int_to_ptr.vmem [resolvable:$true] %s312_s19  ;;  %s315_s22 = int_to_ptr.hbm [resolvable:$true] %s314_s22 }
  0x19   :  { %329 = vmatmul.msk.f32.vlgmr.msra.gmra.mxu1 %vm103_vm0, %v102_v5 }
  0x1a   :  { %299 = vmatpush.msrb.mxu2 %v277_v42 }
  0x1c   :  { %v162_v16 = vld [vmem:[#allocation2] sm:$0x3]  ;;  %300 = vmatpush.msrb.mxu2 %v276_v43 }
  0x1e   :  { %v179_v28 = vld [vmem:[#allocation3] sm:$0x3]  ;;  %301 = vmatpush.msrb.mxu2 %v275_v44 }
  0x1f   :  { %v234_v33 = vld [vmem:[#allocation4] sm:$0x3] }
  0x94   :  { %v126_v9 = vpop.f32.mrf.mxu0 }
  0x96   :  { %v151_v8 = vpop.f32.mrf.mxu1 }
  0x97   :  { %v157_v10 = vrot.slane %v151_v8, 7 }
  0x99   :  { %v159_v11 = vsel %vm158_vm2, %v157_v10, %v126_v9 }
  0x9a   :  { %v161_v12 = vsel %vm154_vm3, -10000.0, %v159_v11 }
  0x9b   :  { %v164_v13 = vsel %vm163_vm4, %v161_v12, -inf }
  0x9c   :  { %165 = vmax.xlane.f32.xlu0 %v164_v13 }
 0x10f   :  { %v166_v17 = vpop.xlane.xlu0 %165 }
 0x110   :  { %v167_v18 = vmax.f32 %v162_v16, %v166_v17 }
 0x112   :  { %v168_v19 = vsub.f32 %v162_v16, %v167_v18  ;;  %249 = vst.msk [vmem:[#allocation2] sm:$0x3] %vm87_vm1, %v167_v18  ;;  %173 = vperm.xlu0 %343, %v167_v18  }
 0x114   :  { %v169_v20 = vmul.f32 1.442695, %v168_v19 }
 0x116   :  { %348 = vpow2.f32 %v169_v20 }
 0x11c   :  { %v349_v21 = vpop.eup %348 }
 0x11d   :  { %237 = vperm.xlu2 %345, %v349_v21   ;;  %v180_v29 = vmul.f32 %v349_v21, %v179_v28 }
 0x177   :  { %v238_v34 = vpop.permute.xlu2 %237 }
 0x178   :  { %v240_v37 = vmul.f32 %v238_v34, %v234_v33 }
 0x184   :  { %v174_v22 = vpop.permute.xlu0 %173 }
 0x185   :  { %v176_v23 = vsub.f32 %v161_v12, %v174_v22 }
 0x187   :  { %v177_v24 = vmul.f32 1.442695, %v176_v23 }
 0x189   :  { %350 = vpow2.f32 %v177_v24 }
 0x18f   :  { %v351_v25 = vpop.eup %350 }
 0x190   :  { %330 = vmatmul.msk.f32.vlgmr.msra.gmra.mxu2 %vm189_vm6, %v351_v25  ;;  %v181_v26 = vsel %vm163_vm4, %v351_v25, 0.0  ;;  %v188_v27 = vrot.slane %v351_v25, 1 }
 0x191   :  { %182 = vadd.xlane.f32.xlu1 %v181_v26 }
 0x192   :  { %331 = vmatmul.msk.f32.vlgmr.msra.gmra.mxu3 %vm189_vm6, %v188_v27 }
 0x204   :  { %v183_v30 = vpop.xlane.xlu1 %182 }
 0x205   :  { %v184_v31 = vadd.f32 %v183_v30, %v180_v29 }
 0x207   :  { %186 = vst.msk [vmem:[#allocation3] sm:$0x3] %vm87_vm1, %v184_v31 }
 0x20e   :  { %v254_v32 = vld [vmem:[#allocation3] sm:$0x3] }
 0x20f   :  { %257 = vperm.xlu1 %344, %v254_v32  }
 0x213   :  { %v209_v38 = vpop.f32.mrf.mxu2 }
 0x215   :  { %v231_v35 = vpop.f32.mrf.mxu3 }
 0x216   :  { %v243_v36 = vrot.slane %v231_v35, 7 }
 0x218   :  { %v244_v39 = vsel %vm158_vm2, %v243_v36, %v209_v38 }
 0x219   :  { %v246_v40 = vadd.f32 %v244_v39, %v240_v37 }
 0x21b   :  { %248 = vst.msk [vmem:[#allocation4] sm:$0x3] %vm90_vm5, %v246_v40 }
 0x222   :  { %v253_v55 = vld [vmem:[#allocation4] sm:$0x3] }
 0x281   :  { %v258_v45 = vpop.permute.xlu1 %257 }
 0x282   :  { %352 = vrcp.f32 %v258_v45  ;;  %v271_v49 = vand.u32 2147483648, %v258_v45  ;;  %v269_v51 = vand.u32 2147483647, %v258_v45  ;;  %vm265_vm8 = vweird.f32 %v258_v45 }
 0x284   :  { %v272_v53 = vor.u32 1.1754944e-38, %v271_v49  ;;  %vm270_vm10 = vcmp.eq.f32.partialorder %v269_v51, 8.507059e+37 }
 0x288   :  { %v353_v46 = vpop.eup %352 }
 0x289   :  { %v261_v47 = vmul.f32 %v353_v46, %v258_v45  ;;  %vm266_vm7 = vweird.f32 %v353_v46 }
 0x28a   :  { %vm267_vm9 = vmor %vm265_vm8, %vm266_vm7 }
 0x28b   :  { %v262_v48 = vsub.f32 1.0, %v261_v47 }
 0x28d   :  { %v263_v50 = vmul.f32 %v353_v46, %v262_v48 }
 0x28f   :  { %v264_v52 = vadd.f32 %v353_v46, %v263_v50 }
 0x291   :  { %v268_v54 = vsel %vm267_vm9, %v353_v46, %v264_v52 }
 0x292   :  { %v273_v56 = vsel %vm270_vm10, %v272_v53, %v268_v54 }
 0x293   :  { %v274_v57 = vmul.f32 %v273_v56, %v253_v55 }
 0x295   :  { %332 = vmatmul.msk.f32.vlgmr.msrb.gmra.mxu2 %vm103_vm0, %v274_v57 }
 0x318   :  { %v303_v59 = vpop.f32.mrf.mxu2 }
 0x319   :  { %v304_v60 = vadd.f32 %v347_v58, %v303_v59 }
 0x31b   :  { %306 = vst [vmem:[#allocation13] sm:$0x3] %v304_v60 }
 0x31c   :  { %317 = dma.vmem_to_hbm [thread:$0]  %s313_s19, 32, %s315_s22, [#allocation7]  }
 0x31d   :  { %480 = dma.done.wait [#allocation7], 32  }
 0x31e   :  { %481 = vsyncadd [#allocation7], 4294967264 }
 0x31f   :  { %322 = vsyncpa [#allocation6], 1 }
 0x320   :  { %323 = vsyncpa [#allocation9], 1 }
 0x321   :  { %324 = vsyncpa [#allocation12], 1 }
 0x322   :  { %325 = vsyncpa [#allocation7], 1 }

</bundles_post_ra>
